<compile_context>
chip_gen: v7x
topology: tpu7x:2x2x1
jax: 0.10.0
libtpu: 0.0.40
codegen_flags: <defaults>
</compile_context>

<pallas_src>
import jax
import jax.numpy as jnp
from jax.experimental import pallas as pl
from jax.experimental.pallas import tpu as pltpu


# ---------------------------------------------------------------------------
# Kernel
# ---------------------------------------------------------------------------
def cell_kernel(w_ref, a_ref, b_ref, o_ref):
    # w_ref: SMEM (2,) f32 (scalar-prefetched Cell.weights)
    # a_ref, b_ref, o_ref: VMEM (tile_r, lanes) f32 tiles
    w0 = w_ref[0]
    w1 = w_ref[1]

    # weighted input aggregation: x = input_0 * w[0] + input_1 * w[1]
    x = a_ref[...] * w0 + b_ref[...] * w1          # memory[0]

    # subnode 1: ReLU(memory[0])
    y = jnp.maximum(x, jnp.float32(0.0))           # memory[1]

    # subnode 2: Add(memory[0], memory[1]) -> returned `out`
    o_ref[...] = x + y


# ---------------------------------------------------------------------------
# Layout selection: wide lane-dense last dim, sublane-aligned rows, bounded tiles
# ---------------------------------------------------------------------------
_LANE_CANDIDATES = (4096, 2048, 1024, 512, 256, 128)
_MAX_TILE_ELEMS = 1 << 20   # 1M f32 elems = 4 MiB per tile buffer (VMEM-safe on v7x)


def _choose_layout(n_elem):
    # Prefer the widest lane extent whose row count is a multiple of 8 (full vregs,
    # unmasked stores); fall back to any divisor; fall back to 128 + padding.
    lanes = None
    for cand in _LANE_CANDIDATES:
        if n_elem % cand == 0 and (n_elem // cand) % 8 == 0:
            lanes = cand
            break
    if lanes is None:
        for cand in _LANE_CANDIDATES:
            if n_elem % cand == 0:
                lanes = cand
                break
    if lanes is None:
        lanes = 128

    rows = -(-n_elem // lanes)                       # ceil
    max_tile_r = max(_MAX_TILE_ELEMS // lanes, 8)    # multiple of 8 for all candidates
    if rows <= max_tile_r:
        tile_r = rows                                # single block == full extent (valid)
        padded_rows = rows
    else:
        tile_r = max_tile_r
        padded_rows = -(-rows // tile_r) * tile_r
    return lanes, tile_r, padded_rows


# ---------------------------------------------------------------------------
# Wrapper
# ---------------------------------------------------------------------------
def cell_forward(inputs, weights):
    """inputs: list of 2 arrays with identical (e.g. NCHW) shape. weights: (2,) f32."""
    assert len(inputs) == 2
    a, b = inputs
    orig_shape = a.shape
    n_elem = a.size

    lanes, tile_r, padded_rows = _choose_layout(n_elem)
    padded_elems = padded_rows * lanes

    a_flat = a.reshape(-1).astype(jnp.float32)
    b_flat = b.reshape(-1).astype(jnp.float32)
    if padded_elems != n_elem:
        pad = padded_elems - n_elem
        a_flat = jnp.pad(a_flat, (0, pad))
        b_flat = jnp.pad(b_flat, (0, pad))
    a2 = a_flat.reshape(padded_rows, lanes)
    b2 = b_flat.reshape(padded_rows, lanes)
    w = weights.astype(jnp.float32)

    grid = (padded_rows // tile_r,)

    # VMEM budget: 3 arrays x 2 pipeline buffers x tile bytes, plus headroom;
    # stays well under v7x's 64 MiB (and the 32 MiB default scoped limit).
    tile_bytes = tile_r * lanes * 4
    vmem_limit = max(min(6 * tile_bytes + (2 << 20), 30 << 20), 4 << 20)

    out2 = pl.pallas_call(
        cell_kernel,
        out_shape=jax.ShapeDtypeStruct((padded_rows, lanes), jnp.float32),
        grid_spec=pltpu.PrefetchScalarGridSpec(
            num_scalar_prefetch=1,                       # weights -> SMEM
            grid=grid,
            in_specs=[
                pl.BlockSpec((tile_r, lanes), lambda i, w_ref: (i, 0)),   # input 0
                pl.BlockSpec((tile_r, lanes), lambda i, w_ref: (i, 0)),   # input 1
            ],
            out_specs=pl.BlockSpec((tile_r, lanes), lambda i, w_ref: (i, 0)),
        ),
        compiler_params=pltpu.CompilerParams(
            dimension_semantics=("parallel",),           # shard row grid across v7x TCs
            vmem_limit_bytes=vmem_limit,
        ),
        cost_estimate=pl.CostEstimate(
            flops=3 * padded_elems,                      # 2 mul+add for weighted sum, 1 add
            transcendentals=0,
            bytes_accessed=12 * padded_elems,            # 2 loads + 1 store, f32
        ),
    )(w, a2, b2)

    out_flat = out2.reshape(-1)
    if padded_elems != n_elem:
        out_flat = out_flat[:n_elem]
    return out_flat.reshape(orig_shape)


# ---------------------------------------------------------------------------
# Pure-JAX reference mirroring Cell.forward with the concrete node tree
# ---------------------------------------------------------------------------
def cell_forward_ref(inputs, weights):
    x = 0
    for i in range(len(inputs)):
        x = x + inputs[i] * weights[i]
    memory = [x]
    memory.append(jnp.maximum(memory[0], 0.0))         # node 1: ReLU
    out = memory[0] + memory[1]                        # node 2: Add
    return out


if __name__ == "__main__":
    key = jax.random.PRNGKey(0)
    k0, k1 = jax.random.split(key)

    B, C, H, W = 2, 4, 16, 16            # NCHW
    in0 = jax.random.normal(k0, (B, C, H, W), dtype=jnp.float32)
    in1 = jax.random.normal(k1, (B, C, H, W), dtype=jnp.float32)

    # Cell.__init__: self.weights = nn.Parameter(torch.ones(in_degree))
    in_degree = 2
    weights = jnp.ones((in_degree,), dtype=jnp.float32)

    out = cell_forward([in0, in1], weights)
    out = jax.block_until_ready(out)

    ref = cell_forward_ref([in0, in1], weights)
    assert out.shape == (B, C, H, W)
    assert jnp.allclose(out, ref, atol=1e-5, rtol=1e-5), "mismatch vs reference"

    print("KERNEL_OK")
</pallas_src>

<mosaic_0001>
module attributes {stable_mosaic.version = 11 : i64} {
  func.func @cell_kernel(%arg0: i32, %arg1: memref<2xf32, #tpu.memory_space<smem>>, %arg2: memref<8x256xf32, #tpu.memory_space<vmem>>, %arg3: memref<8x256xf32, #tpu.memory_space<vmem>>, %arg4: memref<8x256xf32, #tpu.memory_space<vmem>>) attributes {dimension_semantics = [#tpu.dimension_semantics<parallel>], iteration_bounds = array<i64: 1>, scalar_prefetch = 1 : i64, scratch_operands = 0 : i64, tpu.core_type = #tpu.core_type<tc>, window_params = [{transform_indices = @transform_0, window_bounds = array<i64: 8, 256>}, {transform_indices = @transform_1, window_bounds = array<i64: 8, 256>}, {transform_indices = @transform_2, window_bounds = array<i64: 8, 256>}]} {
    %c0 = arith.constant 0 : index
    %0 = memref.load %arg1[%c0] : memref<2xf32, #tpu.memory_space<smem>>
    %c1 = arith.constant 1 : index
    %1 = memref.load %arg1[%c1] : memref<2xf32, #tpu.memory_space<smem>>
    %c0_0 = arith.constant 0 : index
    %c0_1 = arith.constant 0 : index
    %2 = vector.load %arg2[%c0_0, %c0_1] : memref<8x256xf32, #tpu.memory_space<vmem>>, vector<8x256xf32>
    %3 = vector.broadcast %0 : f32 to vector<8x256xf32>
    %4 = arith.mulf %2, %3 : vector<8x256xf32>
    %c0_2 = arith.constant 0 : index
    %c0_3 = arith.constant 0 : index
    %5 = vector.load %arg3[%c0_2, %c0_3] : memref<8x256xf32, #tpu.memory_space<vmem>>, vector<8x256xf32>
    %6 = vector.broadcast %1 : f32 to vector<8x256xf32>
    %7 = arith.mulf %5, %6 : vector<8x256xf32>
    %8 = arith.addf %4, %7 : vector<8x256xf32>
    %cst = arith.constant 0.000000e+00 : f32
    %9 = vector.broadcast %cst : f32 to vector<8x256xf32>
    %10 = arith.maximumf %8, %9 : vector<8x256xf32>
    %11 = arith.addf %8, %10 : vector<8x256xf32>
    %c0_4 = arith.constant 0 : index
    %c0_5 = arith.constant 0 : index
    %12 = vector.load %arg4[%c0_4, %c0_5] : memref<8x256xf32, #tpu.memory_space<vmem>>, vector<8x256xf32>
    tpu.vector_store %arg4[%c0_4, %c0_5], %11 {strides = array<i32>} : memref<8x256xf32, #tpu.memory_space<vmem>>, vector<8x256xf32>,
    return
  }
  func.func @transform_0(%arg0: i32, %arg1: memref<2xf32, #tpu.memory_space<smem>>) -> (i32, i32) {
    %c0_i32 = arith.constant 0 : i32
    %c0_i32_0 = arith.constant 0 : i32
    return %arg0, %c0_i32 : i32, i32
  }
  func.func @transform_1(%arg0: i32, %arg1: memref<2xf32, #tpu.memory_space<smem>>) -> (i32, i32) {
    %c0_i32 = arith.constant 0 : i32
    %c0_i32_0 = arith.constant 0 : i32
    return %arg0, %c0_i32 : i32, i32
  }
  func.func @transform_2(%arg0: i32, %arg1: memref<2xf32, #tpu.memory_space<smem>>) -> (i32, i32) {
    %c0_i32 = arith.constant 0 : i32
    %c0_i32_0 = arith.constant 0 : i32
    return %arg0, %c0_i32 : i32, i32
  }
}

</mosaic_0001>

<bundles_post_ra>
// kernel: tpu_custom_call.1
= control target key start
LH: loop header
LB: loop body
LE: loop exit
PB: predicated region body
PF: predicated region fallthrough
CT: control target
= control target key end

     0   :  { %s238_s0 = inlined_call_operand.hbm [shape: f32[2], index: 0, kind: input, shape index: {}]   ;;  %s239_s1 = inlined_call_operand.hbm [shape: f32[8,256], index: 1, kind: input, shape index: {}]   ;;  %s240_s2 = inlined_call_operand.hbm [shape: f32[8,256], index: 2, kind: input, shape index: {}]   ;;  %s241_s3 = inlined_call_operand.hbm [shape: f32[8,256], index: 3, kind: output, shape index: {}]  }
   0x1   :  { %s82_s14 = scalar_lea.hbm %s238_s0, 16 }
   0x2   :  { %p83_p0 = scmp.ne.s32.totalorder %s238_s0, %s82_s14  ;;  %p86_p1 = scmp.lt.u32.totalorder %s82_s14, %s238_s0 }
   0x4   :  { %p88_p2 = pnand %p86_p1, %p83_p0 }
   0x6   :  { %91 = shalt.err (!%p88_p2)  }
   0x7   :  { %s166_s19 = smov [#allocation3]  }
   0x8   :  { %9 = dma.hbm_to_smem %s238_s0, 16, %s166_s19, [#allocation2] }
   0x9   :  { %158 = dma.done.wait [#allocation2], 16 }
   0xa   :  { %159 = vsyncadd [#allocation2], 4294967280 }
   0xb   :  { %11 = sfence }
   0xc   :  { %12 = vsyncpa [#allocation5], 0 }
   0xd   :  { %13 = vsyncpa [#allocation8], 0 }
   0xe   :  { %14 = vsyncpa [#allocation6], 0  ;;  %s167_s22 = smov [#allocation4]   ;;  %s168_s24 = smov [#allocation7]  }
   0xf   :  { %s21_s23 = sshll.u32 %s167_s22, 4  ;;  %s31_s25 = sshll.u32 %s168_s24, 4  ;;  %s22_s23 = int_to_ptr.vmem [resolvable:$true] %s21_s23  ;;  %s32_s25 = int_to_ptr.vmem [resolvable:$true] %s31_s25 }
  0x10   :  { %s92_s28 = scalar_lea.hbm %s239_s1, 256 }
  0x11   :  { %p93_p3 = scmp.ne.s32.totalorder %s239_s1, %s92_s28  ;;  %p96_p4 = scmp.lt.u32.totalorder %s92_s28, %s239_s1 }
  0x13   :  { %p98_p5 = pnand %p96_p4, %p93_p3 }
  0x15   :  { %101 = shalt.err (!%p98_p5)
}
  0x16   :  { %s102_s5 = scalar_lea.vmem %s22_s23, 256  ;;  %p107_p7 = scmp.lt.s32.totalorder %s22_s23, %s22_s23 }
  0x17   :  { %p103_p6 = scmp.ne.s32.totalorder %s22_s23, %s102_s5  ;;  %p108_p8 = scmp.lt.s32.totalorder %s102_s5, %s102_s5 }
  0x19   :  { %p109_p9 = por %p108_p8, %p107_p7 }
  0x1b   :  { %p110_p10 = pnand %p109_p9, %p103_p6 }
  0x1d   :  { %113 = shalt.err (!%p110_p10)
}
  0x1e   :  { %24 = dma.hbm_to_vmem [thread:$0]  %s239_s1, 256, %s22_s23, [#allocation5]  }
  0x1f   :  { %s114_s10 = scalar_lea.hbm %s240_s2, 256 }
  0x20   :  { %p115_p11 = scmp.ne.s32.totalorder %s240_s2, %s114_s10  ;;  %p118_p12 = scmp.lt.u32.totalorder %s114_s10, %s240_s2 }
  0x22   :  { %p120_p13 = pnand %p118_p12, %p115_p11 }
  0x24   :  { %123 = shalt.err (!%p120_p13)
}
  0x25   :  { %s124_s15 = scalar_lea.vmem %s32_s25, 256  ;;  %p129_p1 = scmp.lt.s32.totalorder %s32_s25, %s32_s25 }
  0x26   :  { %p125_p0 = scmp.ne.s32.totalorder %s32_s25, %s124_s15  ;;  %p130_p2 = scmp.lt.s32.totalorder %s124_s15, %s124_s15 }
  0x28   :  { %p131_p3 = por %p130_p2, %p129_p1 }
  0x2a   :  { %p132_p4 = pnand %p131_p3, %p125_p0 }
  0x2c   :  { %135 = shalt.err (!%p132_p4)
}
  0x2d   :  { %34 = dma.hbm_to_vmem [thread:$0]  %s240_s2, 256, %s32_s25, [#allocation8]  }
  0x2e   :  { %160 = dma.done.wait [#allocation5], 256  }
  0x2f   :  { %161 = vsyncadd [#allocation5], 4294967040 }
  0x30   :  { %162 = dma.done.wait [#allocation8], 256  }
  0x31   :  { %163 = vsyncadd [#allocation8], 4294967040  ;;  %s41_s17 = sld [smem:[#allocation3]]  ;;  %s77_s18 = sld [smem:[#allocation3 + $0x1]]  ;;  %v43_v0 = vld [vmem:[#allocation4] sm:$0xff]  ;;  %v48_v2 = vld [vmem:[#allocation7] sm:$0xff] }
  0x32   :  { %v44_v4 = vld [vmem:[#allocation4 + $0x8] sm:$0xff]  ;;  %v49_v8 = vld [vmem:[#allocation7 + $0x8] sm:$0xff]  ;;  %s169_s2 = smov [#allocation9]  }
  0x33   :  { %s67_s19 = sshll.u32 %s169_s2, 4  ;;  %s68_s19 = int_to_ptr.vmem [resolvable:$true] %s67_s19 }
  0x34   :  { %s136_s20 = scalar_lea.vmem %s68_s19, 256  ;;  %p141_p6 = scmp.lt.s32.totalorder %s68_s19, %s68_s19 }
  0x35   :  { %p137_p5 = scmp.ne.s32.totalorder %s68_s19, %s136_s20  ;;  %p142_p7 = scmp.lt.s32.totalorder %s136_s20, %s136_s20 }
  0x37   :  { %v45_v1 = vstv %s41_s17  ;;  %v50_v3 = vstv %s77_s18  ;;  %p143_p8 = por %p142_p7, %p141_p6 }
  0x38   :  { %v46_v5 = vmul.f32 %v45_v1, %v43_v0  ;;  %v51_v6 = vmul.f32 %v50_v3, %v48_v2  ;;  %v47_v7 = vmul.f32 %v45_v1, %v44_v4  ;;  %v52_v9 = vmul.f32 %v50_v3, %v49_v8 }
  0x39   :  { %p144_p9 = pnand %p143_p8, %p137_p5 }
  0x3a   :  { %v53_v10 = vadd.f32 %v51_v6, %v46_v5  ;;  %v54_v11 = vadd.f32 %v52_v9, %v47_v7 }
  0x3c   :  { %v55_v12 = vmax.f32 %v53_v10, 0.0  ;;  %v56_v13 = vmax.f32 %v54_v11, 0.0 }
  0x3e   :  { %v57_v14 = vadd.f32 %v55_v12, %v53_v10  ;;  %v58_v15 = vadd.f32 %v56_v13, %v54_v11 }
  0x40   :  { %59 = vst [vmem:[#allocation9] sm:$0xff] %v57_v14  ;;  %60 = vst [vmem:[#allocation9 + $0x8] sm:$0xff] %v58_v15 }
  0x41   :  { %147 = shalt.err (!%p144_p9)
}
  0x42   :  { %s148_s23 = scalar_lea.hbm %s241_s3, 256 }
  0x43   :  { %p149_p10 = scmp.ne.s32.totalorder %s241_s3, %s148_s23  ;;  %p152_p11 = scmp.lt.u32.totalorder %s148_s23, %s241_s3 }
  0x45   :  { %p154_p12 = pnand %p152_p11, %p149_p10 }
  0x47   :  { %157 = shalt.err (!%p154_p12)
}
  0x48   :  { %70 = dma.vmem_to_hbm [thread:$0]  %s68_s19, 256, %s241_s3, [#allocation6]  }
  0x49   :  { %164 = dma.done.wait [#allocation6], 256  }
  0x4a   :  { %165 = vsyncadd [#allocation6], 4294967040 }
  0x4b   :  { %74 = vsyncpa [#allocation5], 1 }
  0x4c   :  { %75 = vsyncpa [#allocation8], 1 }
  0x4d   :  { %76 = vsyncpa [#allocation6], 1 }

</bundles_post_ra>
